<compile_context>
chip_gen: v7x
topology: tpu7x:2x2x1
jax: 0.10.0
libtpu: 0.0.40
codegen_flags: <defaults>
</compile_context>

<pallas_src>
import functools

import jax
import jax.numpy as jnp
from jax.experimental import pallas as pl
from jax.experimental.pallas import tpu as pltpu

_INV_SQRT2 = 0.7071067811865476


def _gelu_f32(h, approximate):
    if approximate:
        # tanh approximation runs on the (otherwise idle) EUP, freeing VALU slots.
        return jax.nn.gelu(h, approximate=True)
    # Exact (erf) GELU — matches torch.nn.GELU() default.
    return 0.5 * h * (1.0 + jax.lax.erf(h * jnp.float32(_INV_SQRT2)))


def _ffn_kernel_resident(x_ref, w1_ref, b1_ref, w2_ref, b2_ref, o_ref, *,
                         approximate_gelu):
    # Weights fully VMEM-resident; one fused pass per token tile.
    h = jnp.dot(x_ref[...], w1_ref[...], preferred_element_type=jnp.float32)
    h = _gelu_f32(h + b1_ref[...].astype(jnp.float32), approximate_gelu)
    # Dropout(p=0.0) is identity at inference.
    y = jnp.dot(h.astype(w2_ref.dtype), w2_ref[...],
                preferred_element_type=jnp.float32)
    o_ref[...] = (y + b2_ref[...].astype(jnp.float32)).astype(o_ref.dtype)


def _ffn_kernel_htiled(x_ref, w1_ref, b1_ref, w2_ref, b2_ref, o_ref, acc_ref, *,
                       approximate_gelu):
    # Hidden dim streamed along grid axis 1; f32 partials kept in VMEM scratch.
    k = pl.program_id(1)
    h = jnp.dot(x_ref[...], w1_ref[...], preferred_element_type=jnp.float32)
    h = _gelu_f32(h + b1_ref[...].astype(jnp.float32), approximate_gelu)
    partial = jnp.dot(h.astype(w2_ref.dtype), w2_ref[...],
                      preferred_element_type=jnp.float32)

    @pl.when(k == 0)
    def _():
        acc_ref[...] = partial          # direct store — no zero-fill pass

    @pl.when(k > 0)
    def _():
        acc_ref[...] += partial

    @pl.when(k == pl.num_programs(1) - 1)
    def _():
        o_ref[...] = (acc_ref[...] + b2_ref[...].astype(jnp.float32)).astype(o_ref.dtype)


def _round_up(a, b):
    return ((a + b - 1) // b) * b


def _vmem_budget_bytes():
    # ~0.75x physical VMEM (128 MiB v5e/v6e, 64 MiB v7x); conservative fallback.
    try:
        cap = int(pltpu.get_tpu_info().vmem_capacity_bytes)
    except Exception:
        cap = 64 << 20
    return max(int(0.75 * cap), 32 << 20)


def _const_block_spec(block_shape, index_map, single_buffer):
    # Constant-index blocks (resident weights / biases) only need one VMEM copy.
    if single_buffer:
        try:
            return pl.BlockSpec(block_shape, index_map, pipeline_mode=pl.Buffered(1))
        except Exception:
            pass
    return pl.BlockSpec(block_shape, index_map)


def feed_forward(x, w1, b1, w2, b2, *, dropout_p=0.0, tm=None, th=512,
                 compute_dtype=jnp.bfloat16, approximate_gelu=False,
                 force_hidden_tiling=False):
    """x: (B, N, D).  w1: (D, H), b1: (H,), w2: (H, D), b2: (D,).  Inference only."""
    assert dropout_p == 0.0, "only inference-mode dropout (p=0) is supported"
    # TODO(synk): training-mode dropout (p>0) would need pltpu.prng_random_bits masking.
    B, N, D = x.shape
    H = w1.shape[1]
    M = B * N

    out_dtype = x.dtype
    esz = jnp.dtype(compute_dtype).itemsize
    osz = jnp.dtype(out_dtype).itemsize
    vmem_budget = _vmem_budget_bytes()
    slack = 4 << 20

    # Lane-dense padding (zero padding is exact for this FFN: padded x cols /
    # W1 rows contribute 0, padded hidden units have zero bias and zero W2 rows,
    # GELU(0)=0, padded output cols are sliced off).
    D_pad = _round_up(D, 128)
    H_pad = _round_up(H, 128)

    # Biases stay f32 (tiny traffic, better accuracy); weights/x use compute_dtype.
    w_bytes = 2 * D_pad * H_pad * esz + (H_pad + D_pad) * 4

    def _resident_fit(tm_):
        need = (2 * w_bytes                          # worst case: double-buffered
                + 2 * tm_ * D_pad * (esz + osz)      # double-buffered x / out tiles
                + tm_ * H_pad * 4 + tm_ * D_pad * 4  # f32 intermediates
                + slack)
        return need <= vmem_budget

    user_tm = tm
    prov_tm = _round_up(min(user_tm or 256, _round_up(M, 8)), 8)
    resident = (not force_hidden_tiling) and _resident_fit(prov_tm)

    if user_tm is None:
        if resident:
            tm = 256  # weight-resident path is already compute-bound at tm=256
        else:
            # Streamed-weight fallback: larger token tile raises arithmetic
            # intensity (v5e/v6e: 128 MiB VMEM -> big tiles; v7x: 64 MiB -> smaller).
            tm = 768 if vmem_budget >= (80 << 20) else 320
    else:
        tm = user_tm
    tm = _round_up(min(tm, _round_up(M, 8)), 8)
    if M > 8:
        # Keep >= 2 token tiles so the "parallel" axis shards across v7x's 2 TCs.
        tm = min(tm, _round_up(pl.cdiv(M, 2), 8))
    resident = resident and _resident_fit(tm)
    M_pad = _round_up(M, tm)

    if resident:
        th = H_pad
    else:
        th = _round_up(min(th, H_pad), 128)
        H_pad = _round_up(H_pad, th)

    x2 = jnp.pad(x.reshape(M, D), ((0, M_pad - M), (0, D_pad - D))).astype(compute_dtype)
    w1p = jnp.pad(w1, ((0, D_pad - D), (0, H_pad - H))).astype(compute_dtype)
    b1p = jnp.pad(b1, (0, H_pad - H)).reshape(1, H_pad).astype(jnp.float32)
    w2p = jnp.pad(w2, ((0, H_pad - H), (0, D_pad - D))).astype(compute_dtype)
    b2p = jnp.pad(b2, (0, D_pad - D)).reshape(1, D_pad).astype(jnp.float32)

    grid_i = M_pad // tm

    def _call(single_buffer):
        if resident:
            kernel = functools.partial(_ffn_kernel_resident,
                                       approximate_gelu=approximate_gelu)
            grid = (grid_i,)
            in_specs = [
                pl.BlockSpec((tm, D_pad), lambda i: (i, 0)),                         # x tile
                _const_block_spec((D_pad, H_pad), lambda i: (0, 0), single_buffer),  # W1 resident
                _const_block_spec((1, H_pad), lambda i: (0, 0), single_buffer),      # b1 resident
                _const_block_spec((H_pad, D_pad), lambda i: (0, 0), single_buffer),  # W2 resident
                _const_block_spec((1, D_pad), lambda i: (0, 0), single_buffer),      # b2 resident
            ]
            out_specs = pl.BlockSpec((tm, D_pad), lambda i: (i, 0))
            scratch_shapes = []
            dims = ("parallel",)
            vmem_limit = (2 * w_bytes + 2 * tm * D_pad * (esz + osz)
                          + tm * H_pad * 4 + tm * D_pad * 4 + slack)
        else:
            kernel = functools.partial(_ffn_kernel_htiled,
                                       approximate_gelu=approximate_gelu)
            grid = (grid_i, H_pad // th)
            in_specs = [
                pl.BlockSpec((tm, D_pad), lambda i, k: (i, 0)),                   # x tile
                pl.BlockSpec((D_pad, th), lambda i, k: (0, k)),                   # W1 hidden slice
                pl.BlockSpec((1, th), lambda i, k: (0, k)),                       # b1 hidden slice
                pl.BlockSpec((th, D_pad), lambda i, k: (k, 0)),                   # W2 hidden slice
                _const_block_spec((1, D_pad), lambda i, k: (0, 0), single_buffer),  # b2 (const idx)
            ]
            out_specs = pl.BlockSpec((tm, D_pad), lambda i, k: (i, 0))
            scratch_shapes = [pltpu.VMEM((tm, D_pad), jnp.float32)]
            dims = ("parallel", "arbitrary")
            vmem_limit = (2 * (tm * D_pad * esz + D_pad * th * esz + th * 4
                               + th * D_pad * esz + D_pad * 4 + tm * D_pad * osz)
                          + tm * D_pad * 4       # f32 accumulator scratch
                          + tm * th * 4          # f32 intermediate
                          + slack)

        vmem_limit = int(min(max(vmem_limit, 16 << 20), vmem_budget))
        return pl.pallas_call(
            kernel,
            out_shape=jax.ShapeDtypeStruct((M_pad, D_pad), out_dtype),
            grid_spec=pltpu.PrefetchScalarGridSpec(
                num_scalar_prefetch=0,
                grid=grid,
                in_specs=in_specs,
                out_specs=out_specs,
                scratch_shapes=scratch_shapes,
            ),
            compiler_params=pltpu.CompilerParams(
                dimension_semantics=dims,
                vmem_limit_bytes=vmem_limit,
            ),
        )(x2, w1p, b1p, w2p, b2p)

    try:
        out = _call(single_buffer=True)
    except Exception:
        # pipeline_mode=pl.Buffered(1) not supported here — retry with default
        # double-buffering (semantics identical).
        out = _call(single_buffer=False)

    return out[:M, :D].reshape(B, N, D)


def _ref_ffn(x, w1, b1, w2, b2):
    h = x @ w1 + b1
    h = 0.5 * h * (1.0 + jax.lax.erf(h * jnp.float32(_INV_SQRT2)))
    return h @ w2 + b2


def _init_params(key, dim, hidden):
    # Mimics nn.Linear's uniform(-1/sqrt(fan_in), 1/sqrt(fan_in)) init.
    k1, k2, k3, k4 = jax.random.split(key, 4)
    s1 = 1.0 / jnp.sqrt(dim)
    s2 = 1.0 / jnp.sqrt(hidden)
    w1 = jax.random.uniform(k1, (dim, hidden), jnp.float32, -s1, s1)
    b1 = jax.random.uniform(k2, (hidden,), jnp.float32, -s1, s1)
    w2 = jax.random.uniform(k3, (hidden, dim), jnp.float32, -s2, s2)
    b2 = jax.random.uniform(k4, (dim,), jnp.float32, -s2, s2)
    return w1, b1, w2, b2


if __name__ == "__main__":
    key = jax.random.PRNGKey(0)

    # Case 1: lane-dense small shapes (B=2, N=8 tokens, dim=128, hidden=256).
    B, N, D, H = 2, 8, 128, 256
    kx, kp, kr = jax.random.split(key, 3)
    x = jax.random.normal(kx, (B, N, D), jnp.float32)
    w1, b1, w2, b2 = _init_params(kp, D, H)
    y_ref = _ref_ffn(x, w1, b1, w2, b2)

    # (a) default fast path: bf16 operands, resident weights (loose tolerance).
    y_bf16 = jax.block_until_ready(feed_forward(x, w1, b1, w2, b2))
    assert jnp.allclose(y_bf16, y_ref, atol=1e-1, rtol=1e-1), "bf16 resident path mismatch"

    # (b) f32 operands through the resident kernel (tight check of kernel math).
    y_f32 = jax.block_until_ready(
        feed_forward(x, w1, b1, w2, b2, compute_dtype=jnp.float32))
    assert jnp.allclose(y_f32, y_ref, atol=2e-3, rtol=2e-3), "f32 resident path mismatch"

    # (c) forced hidden-dim streaming fallback (th=128 -> 2 accumulation steps).
    y_tiled = jax.block_until_ready(
        feed_forward(x, w1, b1, w2, b2, compute_dtype=jnp.float32,
                     force_hidden_tiling=True, th=128))
    assert jnp.allclose(y_tiled, y_ref, atol=2e-3, rtol=2e-3), "h-tiled path mismatch"

    # Case 2: ragged shapes exercising the padding path (D=40, H=72, N=5).
    B2, N2, D2, H2 = 2, 5, 40, 72
    kx2, kp2 = jax.random.split(kr)
    xr = jax.random.normal(kx2, (B2, N2, D2), jnp.float32)
    w1b, b1b, w2b, b2b = _init_params(kp2, D2, H2)
    y2 = jax.block_until_ready(
        feed_forward(xr, w1b, b1b, w2b, b2b, compute_dtype=jnp.float32))
    y2_ref = _ref_ffn(xr, w1b, b1b, w2b, b2b)
    assert jnp.allclose(y2, y2_ref, atol=2e-3, rtol=2e-3), "ragged padding mismatch"

    print("KERNEL_OK")
</pallas_src>

<mosaic_0001>
module attributes {stable_mosaic.version = 11 : i64} {
  func.func @_ffn_kernel_resident(%arg0: i32, %arg1: memref<8x128xbf16, #tpu.memory_space<vmem>>, %arg2: memref<128x256xbf16, #tpu.memory_space<vmem>>, %arg3: memref<1x256xf32, #tpu.memory_space<vmem>>, %arg4: memref<256x128xbf16, #tpu.memory_space<vmem>>, %arg5: memref<1x128xf32, #tpu.memory_space<vmem>>, %arg6: memref<8x128xf32, #tpu.memory_space<vmem>>) attributes {dimension_semantics = [#tpu.dimension_semantics<parallel>], iteration_bounds = array<i64: 2>, scalar_prefetch = 0 : i64, scratch_operands = 0 : i64, tpu.core_type = #tpu.core_type<tc>, window_params = [{transform_indices = @transform_0, window_bounds = array<i64: 8, 128>}, {pipeline_mode = #tpu.pipeline_mode<synchronous>, transform_indices = @transform_1, window_bounds = array<i64: 128, 256>}, {pipeline_mode = #tpu.pipeline_mode<synchronous>, transform_indices = @transform_2, window_bounds = array<i64: 1, 256>}, {pipeline_mode = #tpu.pipeline_mode<synchronous>, transform_indices = @transform_3, window_bounds = array<i64: 256, 128>}, {pipeline_mode = #tpu.pipeline_mode<synchronous>, transform_indices = @transform_4, window_bounds = array<i64: 1, 128>}, {transform_indices = @transform_5, window_bounds = array<i64: 8, 128>}]} {
    %c0 = arith.constant 0 : index
    %c0_0 = arith.constant 0 : index
    %0 = vector.load %arg1[%c0, %c0_0] : memref<8x128xbf16, #tpu.memory_space<vmem>>, vector<8x128xbf16>
    %c0_1 = arith.constant 0 : index
    %c0_2 = arith.constant 0 : index
    %1 = vector.load %arg2[%c0_1, %c0_2] : memref<128x256xbf16, #tpu.memory_space<vmem>>, vector<128x256xbf16>
    %cst = arith.constant dense<0.000000e+00> : vector<8x256xf32>
    %2 = tpu.matmul %0, %1, %cst {dimension_numbers = #tpu.dot_dimension_numbers<[1], [0], [0], [1], [0, 0, 1, 1], [], []>} : vector<8x128xbf16>, vector<128x256xbf16>, vector<8x256xf32> -> vector<8x256xf32>
    %c0_3 = arith.constant 0 : index
    %c0_4 = arith.constant 0 : index
    %3 = vector.load %arg3[%c0_3, %c0_4] : memref<1x256xf32, #tpu.memory_space<vmem>>, vector<1x256xf32>
    %4 = vector.broadcast %3 : vector<1x256xf32> to vector<8x256xf32>
    %5 = arith.addf %2, %4 : vector<8x256xf32>
    %cst_5 = arith.constant 5.000000e-01 : f32
    %6 = vector.broadcast %cst_5 : f32 to vector<8x256xf32>
    %7 = arith.mulf %6, %5 : vector<8x256xf32>
    %cst_6 = arith.constant 0.707106769 : f32
    %8 = vector.broadcast %cst_6 : f32 to vector<8x256xf32>
    %9 = arith.mulf %5, %8 : vector<8x256xf32>
    %10 = math.erf %9 : vector<8x256xf32>
    %cst_7 = arith.constant 1.000000e+00 : f32
    %11 = vector.broadcast %cst_7 : f32 to vector<8x256xf32>
    %12 = arith.addf %11, %10 : vector<8x256xf32>
    %13 = arith.mulf %7, %12 : vector<8x256xf32>
    %14 = arith.truncf %13 : vector<8x256xf32> to vector<8x256xbf16>
    %c0_8 = arith.constant 0 : index
    %c0_9 = arith.constant 0 : index
    %15 = vector.load %arg4[%c0_8, %c0_9] : memref<256x128xbf16, #tpu.memory_space<vmem>>, vector<256x128xbf16>
    %cst_10 = arith.constant dense<0.000000e+00> : vector<8x128xf32>
    %16 = tpu.matmul %14, %15, %cst_10 {dimension_numbers = #tpu.dot_dimension_numbers<[1], [0], [0], [1], [0, 0, 1, 1], [], []>} : vector<8x256xbf16>, vector<256x128xbf16>, vector<8x128xf32> -> vector<8x128xf32>
    %c0_11 = arith.constant 0 : index
    %c0_12 = arith.constant 0 : index
    %17 = vector.load %arg5[%c0_11, %c0_12] : memref<1x128xf32, #tpu.memory_space<vmem>>, vector<1x128xf32>
    %18 = vector.broadcast %17 : vector<1x128xf32> to vector<8x128xf32>
    %19 = arith.addf %16, %18 : vector<8x128xf32>
    %c0_13 = arith.constant 0 : index
    %c0_14 = arith.constant 0 : index
    %20 = vector.load %arg6[%c0_13, %c0_14] : memref<8x128xf32, #tpu.memory_space<vmem>>, vector<8x128xf32>
    tpu.vector_store %arg6[%c0_13, %c0_14], %19 {strides = array<i32>} : memref<8x128xf32, #tpu.memory_space<vmem>>, vector<8x128xf32>,
    return
  }
  func.func @transform_0(%arg0: i32) -> (i32, i32) {
    %c0_i32 = arith.constant 0 : i32
    %c0_i32_0 = arith.constant 0 : i32
    return %arg0, %c0_i32 : i32, i32
  }
  func.func @transform_1(%arg0: i32) -> (i32, i32) {
    %c0_i32 = arith.constant 0 : i32
    %c0_i32_0 = arith.constant 0 : i32
    %c0_i32_1 = arith.constant 0 : i32
    return %c0_i32, %c0_i32_0 : i32, i32
  }
  func.func @transform_2(%arg0: i32) -> (i32, i32) {
    %c0_i32 = arith.constant 0 : i32
    %c0_i32_0 = arith.constant 0 : i32
    %c0_i32_1 = arith.constant 0 : i32
    return %c0_i32, %c0_i32_0 : i32, i32
  }
  func.func @transform_3(%arg0: i32) -> (i32, i32) {
    %c0_i32 = arith.constant 0 : i32
    %c0_i32_0 = arith.constant 0 : i32
    %c0_i32_1 = arith.constant 0 : i32
    return %c0_i32, %c0_i32_0 : i32, i32
  }
  func.func @transform_4(%arg0: i32) -> (i32, i32) {
    %c0_i32 = arith.constant 0 : i32
    %c0_i32_0 = arith.constant 0 : i32
    %c0_i32_1 = arith.constant 0 : i32
    return %c0_i32, %c0_i32_0 : i32, i32
  }
  func.func @transform_5(%arg0: i32) -> (i32, i32) {
    %c0_i32 = arith.constant 0 : i32
    %c0_i32_0 = arith.constant 0 : i32
    return %arg0, %c0_i32 : i32, i32
  }
}

module attributes {stable_mosaic.version = 11 : i64} {
  func.func @_ffn_kernel_resident(%arg0: i32, %arg1: memref<8x128xbf16, #tpu.memory_space<vmem>>, %arg2: memref<128x256xbf16, #tpu.memory_space<vmem>>, %arg3: memref<1x256xf32, #tpu.memory_space<vmem>>, %arg4: memref<256x128xbf16, #tpu.memory_space<vmem>>, %arg5: memref<1x128xf32, #tpu.memory_space<vmem>>, %arg6: memref<8x128xf32, #tpu.memory_space<vmem>>) attributes {dimension_semantics = [#tpu.dimension_semantics<parallel>], iteration_bounds = array<i64: 2>, scalar_prefetch = 0 : i64, scratch_operands = 0 : i64, tpu.core_type = #tpu.core_type<tc>, window_params = [{transform_indices = @transform_0, window_bounds = array<i64: 8, 128>}, {pipeline_mode = #tpu.pipeline_mode<synchronous>, transform_indices = @transform_1, window_bounds = array<i64: 128, 256>}, {pipeline_mode = #tpu.pipeline_mode<synchronous>, transform_indices = @transform_2, window_bounds = array<i64: 1, 256>}, {pipeline_mode = #tpu.pipeline_mode<synchronous>, transform_indices = @transform_3, window_bounds = array<i64: 256, 128>}, {pipeline_mode = #tpu.pipeline_mode<synchronous>, transform_indices = @transform_4, window_bounds = array<i64: 1, 128>}, {transform_indices = @transform_5, window_bounds = array<i64: 8, 128>}]} {
    %c0 = arith.constant 0 : index
    %c0_0 = arith.constant 0 : index
    %0 = vector.load %arg1[%c0, %c0_0] : memref<8x128xbf16, #tpu.memory_space<vmem>>, vector<8x128xbf16>
    %c0_1 = arith.constant 0 : index
    %c0_2 = arith.constant 0 : index
    %1 = vector.load %arg2[%c0_1, %c0_2] : memref<128x256xbf16, #tpu.memory_space<vmem>>, vector<128x256xbf16>
    %cst = arith.constant dense<0.000000e+00> : vector<8x256xf32>
    %2 = tpu.matmul %0, %1, %cst {dimension_numbers = #tpu.dot_dimension_numbers<[1], [0], [0], [1], [0, 0, 1, 1], [], []>} : vector<8x128xbf16>, vector<128x256xbf16>, vector<8x256xf32> -> vector<8x256xf32>
    %c0_3 = arith.constant 0 : index
    %c0_4 = arith.constant 0 : index
    %3 = vector.load %arg3[%c0_3, %c0_4] : memref<1x256xf32, #tpu.memory_space<vmem>>, vector<1x256xf32>
    %4 = vector.broadcast %3 : vector<1x256xf32> to vector<8x256xf32>
    %5 = arith.addf %2, %4 : vector<8x256xf32>
    %cst_5 = arith.constant 5.000000e-01 : f32
    %6 = vector.broadcast %cst_5 : f32 to vector<8x256xf32>
    %7 = arith.mulf %6, %5 : vector<8x256xf32>
    %cst_6 = arith.constant 0.707106769 : f32
    %8 = vector.broadcast %cst_6 : f32 to vector<8x256xf32>
    %9 = arith.mulf %5, %8 : vector<8x256xf32>
    %10 = math.erf %9 : vector<8x256xf32>
    %cst_7 = arith.constant 1.000000e+00 : f32
    %11 = vector.broadcast %cst_7 : f32 to vector<8x256xf32>
    %12 = arith.addf %11, %10 : vector<8x256xf32>
    %13 = arith.mulf %7, %12 : vector<8x256xf32>
    %14 = arith.truncf %13 : vector<8x256xf32> to vector<8x256xbf16>
    %c0_8 = arith.constant 0 : index
    %c0_9 = arith.constant 0 : index
    %15 = vector.load %arg4[%c0_8, %c0_9] : memref<256x128xbf16, #tpu.memory_space<vmem>>, vector<256x128xbf16>
    %cst_10 = arith.constant dense<0.000000e+00> : vector<8x128xf32>
    %16 = tpu.matmul %14, %15, %cst_10 {dimension_numbers = #tpu.dot_dimension_numbers<[1], [0], [0], [1], [0, 0, 1, 1], [], []>} : vector<8x256xbf16>, vector<256x128xbf16>, vector<8x128xf32> -> vector<8x128xf32>
    %c0_11 = arith.constant 0 : index
    %c0_12 = arith.constant 0 : index
    %17 = vector.load %arg5[%c0_11, %c0_12] : memref<1x128xf32, #tpu.memory_space<vmem>>, vector<1x128xf32>
    %18 = vector.broadcast %17 : vector<1x128xf32> to vector<8x128xf32>
    %19 = arith.addf %16, %18 : vector<8x128xf32>
    %c0_13 = arith.constant 0 : index
    %c0_14 = arith.constant 0 : index
    %20 = vector.load %arg6[%c0_13, %c0_14] : memref<8x128xf32, #tpu.memory_space<vmem>>, vector<8x128xf32>
    tpu.vector_store %arg6[%c0_13, %c0_14], %19 {strides = array<i32>} : memref<8x128xf32, #tpu.memory_space<vmem>>, vector<8x128xf32>,
    return
  }
  func.func @transform_0(%arg0: i32) -> (i32, i32) {
    %c0_i32 = arith.constant 0 : i32
    %c0_i32_0 = arith.constant 0 : i32
    return %arg0, %c0_i32 : i32, i32
  }
  func.func @transform_1(%arg0: i32) -> (i32, i32) {
    %c0_i32 = arith.constant 0 : i32
    %c0_i32_0 = arith.constant 0 : i32
    %c0_i32_1 = arith.constant 0 : i32
    return %c0_i32, %c0_i32_0 : i32, i32
  }
  func.func @transform_2(%arg0: i32) -> (i32, i32) {
    %c0_i32 = arith.constant 0 : i32
    %c0_i32_0 = arith.constant 0 : i32
    %c0_i32_1 = arith.constant 0 : i32
    return %c0_i32, %c0_i32_0 : i32, i32
  }
  func.func @transform_3(%arg0: i32) -> (i32, i32) {
    %c0_i32 = arith.constant 0 : i32
    %c0_i32_0 = arith.constant 0 : i32
    %c0_i32_1 = arith.constant 0 : i32
    return %c0_i32, %c0_i32_0 : i32, i32
  }
  func.func @transform_4(%arg0: i32) -> (i32, i32) {
    %c0_i32 = arith.constant 0 : i32
    %c0_i32_0 = arith.constant 0 : i32
    %c0_i32_1 = arith.constant 0 : i32
    return %c0_i32, %c0_i32_0 : i32, i32
  }
  func.func @transform_5(%arg0: i32) -> (i32, i32) {
    %c0_i32 = arith.constant 0 : i32
    %c0_i32_0 = arith.constant 0 : i32
    return %arg0, %c0_i32 : i32, i32
  }
}

</mosaic_0001>

<bundles_post_ra>
// kernel: tpu_custom_call.1
= control target key start
LH: loop header
LB: loop body
LE: loop exit
PB: predicated region body
PF: predicated region fallthrough
CT: control target
= control target key end

     0   :  { %10 = vsyncpa [#allocation3], 0  ;;  %s1334_s0 = inlined_call_operand.hbm [shape: bf16[16,128], index: 0, kind: input, shape index: {}]   ;;  %s1335_s1 = inlined_call_operand.hbm [shape: bf16[128,256], index: 1, kind: input, shape index: {}]   ;;  %s1336_s2 = inlined_call_operand.vmem [shape: f32[1,256], index: 2, kind: input, shape index: {}]   ;;  %s1337_s3 = inlined_call_operand.hbm [shape: bf16[256,128], index: 3, kind: input, shape index: {}]   ;;  %s1338_s4 = inlined_call_operand.vmem [shape: f32[1,128], index: 4, kind: input, shape index: {}]   ;;  %s1339_s5 = inlined_call_operand.hbm [shape: f32[16,128], index: 5, kind: output, shape index: {}]  }
   0x1   :  { %12 = vsyncpa [#allocation3 + $0x1], 0 }
   0x2   :  { %13 = vsyncpa [#allocation6], 0 }
   0x3   :  { %14 = vsyncpa [#allocation4], 0 }
   0x4   :  { %16 = vsyncpa [#allocation4 + $0x1], 0  ;;  %s1095_s18 = smov 0   ;;  %s1097_s19 = smov 0  }
   0x5   :  { %s1099_s20 = smov 0   ;;  %s1101_s21 = smov 0  }
   0x6 LB: > { %s1116_s22 = sadd.s32 4294967295, %s1054_s21   ;;  %s711_s23 = sadd.s32 4294967294, %s1054_s21   ;;  %s1054_s21 = sphi %s1101_s21, %s1359_s21   ;;  %s1050_s20 = sphi %s1099_s20, %s1358_s20   ;;  %s1046_s19 = sphi %s1097_s19, %s1357_s19   ;;  %s1042_s18 = sphi %s1095_s18, %s1356_s18  }
   0x7   : > { %p42_p0 = scmp.ne.s32.totalorder %s1046_s19, %s1042_s18  ;;  %p1340_p1 = scmp.eq.s32.totalorder %s1116_s22, 0 }
   0x8   : > { %p156_p3 = scmp.eq.s32.totalorder %s711_s23, 1  ;;  %p712_p5 = scmp.ge.s32.totalorder %s1054_s21, 1 }
   0x9   : > { %p1125_p4 = por %p1340_p1, %p42_p0  ;;  %p163_p7 = scmp.lt.s32.totalorder %s1054_s21, 3 }
   0xa   : > { %p1130_p6 = por %p156_p3, %p42_p0  ;;  %s1056_s27 = smov [#allocation5]  }
   0xb   : > { %s1343_s24 = scalar_select %p1125_p4, 1, 0 }
   0xc   : > { %s1344_s25 = scalar_select %p1130_p6, 1, 0 }
   0xd   : > { %p1135_p8 = pnand %p712_p5, %p163_p7  ;;  %s175_s28 = sshll.u32 %s1056_s27, 4  ;;  %s1139_s28 = int_to_ptr.vmem [resolvable:$true] %s175_s28 }
   0xe   : > { %s1057_s30 = smov [#allocation7]   ;;  %s898_s9 = scalar_lea.hbm %s1335_s1, 2048 }
   0xf   : > { %p794_p9 = pneg %p1135_p8  ;;  %s191_s6 = sshll.u32 %s1057_s30, 4  ;;  %s1150_s6 = int_to_ptr.vmem [resolvable:$true] %s191_s6 }
  0x10   : > { %p899_p12 = scmp.ne.s32.totalorder %s1335_s1, %s898_s9  ;;  %p905_p5 = scmp.lt.u32.totalorder %s898_s9, %s1335_s1 }
  0x11   : > { %p1146_p11 = pnand %p794_p9, %p1340_p1 }
  0x13   : > { %p900_p13 = pneg %p1146_p11 }
  0x15   : > { %p901_p0 = pnand %p900_p13, %p899_p12 }
  0x17   : > { %p902_p3 = pneg %p901_p0 }
  0x19   : > { %p907_p7 = pnand %p905_p5, %p902_p3 }
  0x1b   : > { %910 = shalt.err (!%p907_p7)
}
  0x1c   : > { %s911_s14 = scalar_lea.vmem %s1139_s28, 2048  ;;  %p919_p2 = scmp.lt.s32.totalorder %s1139_s28, %s1139_s28 }
  0x1d   : > { %p912_p9 = scmp.ne.s32.totalorder %s1139_s28, %s911_s14  ;;  %p920_p12 = scmp.lt.s32.totalorder %s911_s14, %s911_s14 }
  0x1f   : > { %p914_p10 = pnand %p912_p9, %p900_p13  ;;  %p921_p0 = por %p920_p12, %p919_p2 }
  0x21   : > { %p915_p1 = pneg %p914_p10 }
  0x23   : > { %p922_p6 = pnand %p921_p0, %p915_p1 }
  0x25   : > { %925 = shalt.err (!%p922_p6)
}
  0x26   : > { %s1058_s15 = smov 128   ;;  %s1059_s16 = smov 8  }
  0x27   : > { %797 = dma.hbm_to_vmem [thread:$0]  (!%p1146_p11), %s1335_s1, 2048, %s1139_s28, [#allocation6], %s1058_s15, %s1058_s15, %s1059_s16  }
  0x28   : > { %s926_s7 = scalar_lea.hbm %s1337_s3, 2048 }
  0x29   : > { %p927_p2 = scmp.ne.s32.totalorder %s1337_s3, %s926_s7  ;;  %p933_p10 = scmp.lt.u32.totalorder %s926_s7, %s1337_s3 }
  0x2b   : > { %p929_p1 = pnand %p927_p2, %p900_p13 }
  0x2d   : > { %p930_p6 = pneg %p929_p1 }
  0x2f   : > { %p935_p3 = pnand %p933_p10, %p930_p6 }
  0x31   : > { %938 = shalt.err (!%p935_p3)
}
  0x32   : > { %s939_s28 = scalar_lea.vmem %s1150_s6, 2048  ;;  %p947_p12 = scmp.lt.s32.totalorder %s1150_s6, %s1150_s6 }
  0x33   : > { %p940_p5 = scmp.ne.s32.totalorder %s1150_s6, %s939_s28  ;;  %p948_p0 = scmp.lt.s32.totalorder %s939_s28, %s939_s28 }
  0x35   : > { %p942_p7 = pnand %p940_p5, %p900_p13  ;;  %p949_p2 = por %p948_p0, %p947_p12 }
  0x37   : > { %p943_p9 = pneg %p942_p7 }
  0x39   : > { %p950_p1 = pnand %p949_p2, %p943_p9 }
  0x3b   : > { %953 = shalt.err (!%p950_p1)
}
  0x3c   : > { %s1060_s12 = smov 64   ;;  %s1061_s13 = smov 4  }
  0x3d   : > { %800 = dma.hbm_to_vmem [thread:$0]  (!%p1146_p11), %s1337_s3, 2048, %s1150_s6, [#allocation6], %s1060_s12, %s1060_s12, %s1061_s13  }
  0x3e   : > { %s1205_s16 = sadd.s32 1, %s1054_s21   ;;  %s29_s23 = sadd.s32 1, %s1050_s20 }
  0x3f   : > { %s26_s17 = ssub.s32 %s1054_s21, %s1205_s16  ;;  %p36_p6 = scmp.ne.s32.totalorder %s1050_s20, %s1046_s19 }
  0x40   : > { %p27_p13 = scmp.eq.s32.totalorder %s26_s17, 0  ;;  %p37_p10 = scmp.eq.s32.totalorder %s1054_s21, 0 }
  0x41   : > { %p1347_p5 = scmp.eq.s32.totalorder %s1116_s22, 1  ;;  %p811_p9 = scmp.lt.s32.totalorder %s1054_s21, 2 }
  0x42   : > { %s1214_s27 = scalar_select %p27_p13, %s1050_s20, %s29_s23  }
  0x43   : > { %p38_p3 = por %p37_p10, %p36_p6  ;;  %p1218_p7 = por %p1347_p5, %p36_p6 }
  0x44   : > { %s208_s29 = sand.u32 1, %s1050_s20   ;;  %s717_s6 = sshll.u32 %s1054_s21, 6 }
  0x45   : > { %s1348_s30 = scalar_select %p1218_p7, 1, 0 }
  0x46   : > { %s716_s7 = sshll.u32 %s208_s29, 2  ;;  %s1228_s10 = scalar_lea.hbm %s1334_s0, %s717_s6 }
  0x47   : > { %s212_s11 = scalar_lea.vmem [#allocation2], %s716_s7  ;;  %p1232_p11 = pnand %p811_p9, %p38_p3 }
  0x48   : > { %s219_s28 = sshll.u32 %s212_s11, 4  ;;  %s209_s13 = scalar_lea.sflag [#allocation3], %s208_s29  ;;  %s1230_s28 = int_to_ptr.vmem [resolvable:$true] %s219_s28 }
  0x49   : > { %s954_s14 = scalar_lea.hbm %s1228_s10, 64  ;;  %p956_p0 = pneg %p1232_p11 }
  0x4a   : > { %p955_p12 = scmp.ne.s32.totalorder %s1228_s10, %s954_s14  ;;  %s959_s23 = scalar_lea.hbm %s1334_s0, 128 }
  0x4b   : > { %p960_p13 = scmp.lt.u32.totalorder %s1228_s10, %s1334_s0  ;;  %p961_p6 = scmp.lt.u32.totalorder %s959_s23, %s954_s14 }
  0x4c   : > { %p957_p2 = pnand %p956_p0, %p955_p12  ;;  %p963_p3 = scmp.lt.u32.totalorder %s954_s14, %s1228_s10 }
  0x4d   : > { %p962_p10 = por %p961_p6, %p960_p13 }
  0x4e   : > { %p958_p1 = pneg %p957_p2 }
  0x4f   : > { %p964_p5 = por %p963_p3, %p962_p10 }
  0x51   : > { %p965_p9 = pnand %p964_p5, %p958_p1 }
  0x53   : > { %968 = shalt.err (!%p965_p9)
}
  0x54   : > { %s969_s29 = scalar_lea.vmem %s1230_s28, 64  ;;  %s1062_s8 = smov [#allocation2]  }
  0x55   : > { %p970_p12 = scmp.ne.s32.totalorder %s1230_s28, %s969_s29  ;;  %s974_s9 = sshll.u32 %s1062_s8, 4  ;;  %s975_s9 = int_to_ptr.vmem [resolvable:$false] %s974_s9 }
  0x56   : > { %s976_s11 = scalar_lea.vmem %s975_s9, 128  ;;  %p977_p4 = scmp.lt.s32.totalorder %s1230_s28, %s975_s9 }
  0x57   : > { %p972_p2 = pnand %p970_p12, %p956_p0  ;;  %p978_p13 = scmp.lt.s32.totalorder %s976_s11, %s969_s29 }
  0x59   : > { %p973_p7 = pneg %p972_p2  ;;  %p979_p6 = por %p978_p13, %p977_p4 }
  0x5b   : > { %p980_p10 = pnand %p979_p6, %p973_p7 }
  0x5d   : > { %983 = shalt.err (!%p980_p10)
}
  0x5e   : > { %804 = dma.hbm_to_vmem [thread:$0]  (!%p1232_p11), %s1228_s10, 64, %s1230_s28, %s209_s13  }
  0x5f   : > { %228 = sbr.rel (%p1135_p8) target bundleno = 605 (0x25d), region = 40  ;;  %s1264_s14 = sand.u32 (!%p1135_p8), 1, %s1046_s19  }
  0x60   : > { %s719_s15 = sshll.u32 (!%p1135_p8), %s1264_s14, 2  ;;  %s231_s17 = scalar_lea.sflag (!%p1135_p8), [#allocation3], %s1264_s14 }
  0x61   : > { %s1268_s23 = scalar_lea.vmem (!%p1135_p8), [#allocation2], %s719_s15  ;;  %p1350_p4 = scmp.ne.s32.totalorder (!%p1135_p8), %s1343_s24, 0 }
  0x66   : > { %1029 = dma.done.wait (%p1350_p4), %s231_s17, 64  }
  0x67   : > { %1031 = vsyncadd (%p1350_p4), %s231_s17, 4294967232  ;;  %p1351_p7 = scmp.eq.s32.totalorder %s1116_s22, 0 }
  0x69   : > { %1033 = dma.done.wait (%p1351_p7), [#allocation6], 4096   ;;  %p1352_p8 = pmov %p1351_p7 }
  0x6a   : > { %v1063_v0 = vmov 0   ;;  %v854_v1 = vld [vmem:[#allocation5 + $0x4] ss:$8 sps:$4 sm:$0xff]   ;;  %v856_v2 = vld [vmem:[#allocation5] ss:$8 sps:$4 sm:$0xff]   ;;  %v882_v22 = vld [vmem:[#allocation7 + $0x50] sm:$0xff]   ;;  %v289_v34 = vlaneseq }
  0x6b   : > { %1035 = vsyncadd (%p1352_p8), [#allocation6], 4294963200  ;;  %411 = vmatprep.mubr.bf16.mxu0 %v1063_v0  ;;  %379 = vmatprep.subr.bf16.mxu0 %v854_v1  ;;  %v857_v3 = vld [vmem:[#allocation5 + $0x14] ss:$8 sps:$4 sm:$0xff]   ;;  %v859_v4 = vld [vmem:[#allocation5 + $0x10] ss:$8 sps:$4 sm:$0xff]  }
  0x6c   : > { %380 = vmatpush1.bf16.msra.mxu0 %v856_v2  ;;  %v860_v5 = vld [vmem:[#allocation5 + $0x24] ss:$8 sps:$4 sm:$0xff]   ;;  %v862_v6 = vld [vmem:[#allocation5 + $0x20] ss:$8 sps:$4 sm:$0xff]   ;;  %v863_v7 = vld [vmem:[#allocation5 + $0x34] ss:$8 sps:$4 sm:$0xff]  }
  0x6d   : > { %381 = vmatprep.subr.bf16.mxu0 %v857_v3  ;;  %v865_v8 = vld [vmem:[#allocation5 + $0x30] ss:$8 sps:$4 sm:$0xff]   ;;  %v866_v9 = vld [vmem:[#allocation5 + $0x44] ss:$8 sps:$4 sm:$0xff]   ;;  %v868_v12 = vld [vmem:[#allocation5 + $0x40] ss:$8 sps:$4 sm:$0xff]  }
  0x6e   : > { %v878_v10 = vld [vmem:[#allocation7 + $0x40] sm:$0xff]   ;;  %v880_v13 = vld [vmem:[#allocation7 + $0x48] sm:$0xff]   ;;  %v869_v15 = vld [vmem:[#allocation5 + $0x54] ss:$8 sps:$4 sm:$0xff]   ;;  %v290_v35 = vshrl.u32 %v289_v34, 7  ;;  %s722_s10 = sshll.u32 %s1264_s14, 3 }
  0x6f   : > { %v879_v11 = vld [vmem:[#allocation7] sm:$0xff]   ;;  %760 = vmatprep.subr.bf16.mxu1 %v878_v10  ;;  %v881_v14 = vld [vmem:[#allocation7 + $0x8] sm:$0xff]   ;;  %v871_v16 = vld [vmem:[#allocation5 + $0x50] ss:$8 sps:$4 sm:$0xff]   ;;  %s757_s13 = sshll.u32 %s1116_s22, 7  ;;  %s268_s7 = scalar_lea.vmem [#allocation8], %s722_s10 }
  0x70   : > { %382 = vmatpush1.bf16.msra.mxu0 %v859_v4  ;;  %761 = vmatpush3.bf16.msra.mxu1 %v879_v11  ;;  %v872_v17 = vld [vmem:[#allocation5 + $0x64] ss:$8 sps:$4 sm:$0xff]   ;;  %v874_v18 = vld [vmem:[#allocation5 + $0x60] ss:$8 sps:$4 sm:$0xff]   ;;  %v875_v19 = vld [vmem:[#allocation5 + $0x74] ss:$8 sps:$4 sm:$0xff]   ;;  %s1290_s9 = scalar_lea.hbm %s1339_s5, %s757_s13 }
  0x71   : > { %383 = vmatprep.subr.bf16.mxu0 %v860_v5  ;;  %762 = vmatprep.subr.bf16.mxu1 %v880_v13  ;;  %v877_v20 = vld [vmem:[#allocation5 + $0x70] ss:$8 sps:$4 sm:$0xff]   ;;  %v886_v26 = vld [vmem:[#allocation7 + $0x60] sm:$0xff]   ;;  %v888_v28 = vld [vmem:[#allocation7 + $0x68] sm:$0xff]   ;;  %v291_v36 = vsub.s32 0, %v290_v35  ;;  %v295_v38 = vsub.s32 1, %v290_v35 }
  0x72   : > { %v270_v21 = vld [vmem:[%s1268_s23] sm:$0xf]  ;;  %v883_v23 = vld [vmem:[#allocation7 + $0x10] sm:$0xff]   ;;  %v887_v27 = vld [vmem:[#allocation7 + $0x20] sm:$0xff]   ;;  %s622_s6 = sshll.u32 %s268_s7, 4  ;;  %s609_s11 = scalar_lea.sflag [#allocation4], %s1264_s14  ;;  %s1292_s6 = int_to_ptr.vmem [resolvable:$true] %s622_s6 }
  0x73   : > { %v884_v24 = vld [vmem:[#allocation7 + $0x58] sm:$0xff]   ;;  %v889_v29 = vld [vmem:[#allocation7 + $0x28] sm:$0xff]   ;;  %v890_v30 = vld [vmem:[#allocation7 + $0x70] sm:$0xff]   ;;  %s984_s15 = scalar_lea.vmem %s1292_s6, 128  ;;  %p1353_p0 = scmp.ne.s32.totalorder %s1348_s30, 0 }
  0x74   : > { %384 = vmatpush1.bf16.msra.mxu0 %v862_v6  ;;  %763 = vmatpush3.bf16.msra.mxu1 %v881_v14  ;;  %v885_v25 = vld [vmem:[#allocation7 + $0x18] sm:$0xff]   ;;  %v891_v31 = vld [vmem:[#allocation7 + $0x30] sm:$0xff]   ;;  %p985_p11 = scmp.ne.s32.totalorder %s1292_s6, %s984_s15  ;;  %s1064_s22 = smov [#allocation8]  }
  0x75   : > { %385 = vmatprep.subr.bf16.mxu0 %v863_v7  ;;  %764 = vmatprep.subr.bf16.mxu1 %v882_v22  ;;  %v892_v32 = vld [vmem:[#allocation7 + $0x78] sm:$0xff]   ;;  %s988_s17 = sshll.u32 %s1064_s22, 4  ;;  %s989_s17 = int_to_ptr.vmem [resolvable:$false] %s988_s17 }
  0x76   : > { %v893_v33 = vld [vmem:[#allocation7 + $0x38] sm:$0xff]   ;;  %p986_p1 = pnand %p985_p11, %p1353_p0  ;;  %s990_s23 = scalar_lea.vmem %s989_s17, 256 }
  0x77   : > { %v287_v37 = vld [vmem:[%s1336_s2] sm:$0x3]  ;;  %p991_p5 = scmp.lt.s32.totalorder %s1292_s6, %s989_s17  ;;  %p992_p9 = scmp.lt.s32.totalorder %s990_s23, %s984_s15 }
  0x78   : > { %386 = vmatpush1.bf16.msra.mxu0 %v865_v8  ;;  %765 = vmatpush3.bf16.msra.mxu1 %v883_v23  ;;  %v292_v39 = vrot.slane %v287_v37, %v291_v36  ;;  %v296_v40 = vrot.slane %v287_v37, %v295_v38  ;;  %v739_v60 = vld [vmem:[%s1338_s4] ss:$0 sm:$0xff]  ;;  %p987_p3 = pneg %p986_p1 }
  0x79   : > { %387 = vmatprep.subr.bf16.mxu0 %v866_v9  ;;  %766 = vmatprep.subr.bf16.mxu1 %v884_v24  ;;  %p993_p12 = por %p992_p9, %p991_p5 }
  0x7b   : > { %p994_p2 = pnand %p993_p12, %p987_p3 }
  0x7c   : > { %388 = vmatpush1.bf16.msra.mxu0 %v868_v12  ;;  %767 = vmatpush3.bf16.msra.mxu1 %v885_v25 }
  0x7d   : > { %389 = vmatprep.subr.bf16.mxu0 %v869_v15  ;;  %768 = vmatprep.subr.bf16.mxu1 %v886_v26 }
  0x80   : > { %390 = vmatpush1.bf16.msra.mxu0 %v871_v16  ;;  %769 = vmatpush3.bf16.msra.mxu1 %v887_v27 }
  0x81   : > { %391 = vmatprep.subr.bf16.mxu0 %v872_v17  ;;  %770 = vmatprep.subr.bf16.mxu1 %v888_v28 }
  0x84   : > { %392 = vmatpush1.bf16.msra.mxu0 %v874_v18  ;;  %771 = vmatpush3.bf16.msra.mxu1 %v889_v29 }
  0x85   : > { %393 = vmatprep.subr.bf16.mxu0 %v875_v19  ;;  %772 = vmatprep.subr.bf16.mxu1 %v890_v30 }
  0x88   : > { %394 = vmatpush1.bf16.msra.mxu0 %v877_v20  ;;  %773 = vmatpush3.bf16.msra.mxu1 %v891_v31 }
  0x89   : > { %774 = vmatprep.subr.bf16.mxu1 %v892_v32 }
  0x8b   : > { %412 = vmatmul.mubr.bf16.vlgmr.msra.gmra.mrb[0].mxu0 %v270_v21 }
  0x8c   : > { %775 = vmatpush3.bf16.msra.mxu1 %v893_v33 }
 0x15e   : > { %v413_v41 = vpop.f32.mrb[0].mxu0 }
 0x15f   : > { %v414_v42 = vadd.f32 %v413_v41, %v292_v39  ;;  %v415_v43 = vpop.f32.mrb[1].mxu0 }
 0x160   : > { %v416_v44 = vadd.f32 %v415_v43, %v296_v40  ;;  %v417_v45 = vpop.f32.mrb[2].mxu0 }
 0x161   : > { %v422_v46 = vmul.f32 0.70710677, %v414_v42  ;;  %v418_v47 = vpop.f32.mrb[3].mxu0  ;;  %v420_v51 = vmul.f32 0.5, %v414_v42 }
 0x162   : > { %v423_v48 = vmul.f32 0.70710677, %v416_v44  ;;  %v421_v53 = vmul.f32 0.5, %v416_v44 }
 0x163   : > { %894 = verf.f32 %v422_v46 }
 0x164   : > { %896 = verf.f32 %v423_v48 }
 0x16d   : > { %v895_v49 = vpop.eup %894 }
 0x16e   : > { %v897_v50 = vpop.eup %896  ;;  %v426_v52 = vadd.f32 1.0, %v895_v49 }
 0x16f   : > { %v427_v54 = vadd.f32 1.0, %v897_v50 }
 0x170   : > { %v428_v55 = vmul.f32 %v426_v52, %v420_v51 }
 0x171   : > { %v429_v56 = vmul.f32 %v427_v54, %v421_v53 }
 0x172   : > { %v430_v58 = vpack.c.bf16 %v428_v55, %v428_v55 }
 0x173   : > { %v431_v57 = vpack.c.bf16 %v429_v56, %v429_v56 }
 0x175   : > { %599 = vmatprep.mubr.bf16.mxu1 %v431_v57 }
 0x176   : > { %600 = vmatmul.mubr.bf16.vlgmr.msra.gmra.mrb[0].mxu1 %v430_v58 }
 0x249   : > { %v776_v59 = vpop.f32.mrb[0].mxu1 }
 0x24a   : > { %v777_v61 = vpop.f32.mrb[1].mxu1 }
 0x24b   : > { %v778_v62 = vadd.f32 %v777_v61, %v776_v59  ;;  %v779_v63 = vpop.f32.mrb[2].mxu1 }
 0x24c   : > { %v780_v0 = vpop.f32.mrb[3].mxu1 }
 0x24d   : > { %v602_v1 = vadd.f32 %v778_v62, %v739_v60 }
 0x24f   : > { %607 = vst [vmem:[%s268_s7] sm:$0xff] %v602_v1 }
 0x250   : > { %997 = shalt.err (!%p994_p2)
}
 0x251   : > { %s998_s14 = scalar_lea.hbm %s1290_s9, 128  ;;  %s1002_s10 = scalar_lea.hbm %s1339_s5, 256 }
 0x252   : > { %p999_p13 = scmp.ne.s32.totalorder %s1290_s9, %s998_s14  ;;  %p1003_p4 = scmp.lt.u32.totalorder %s1290_s9, %s1339_s5 }
 0x253   : > { %p1004_p7 = scmp.lt.u32.totalorder %s1002_s10, %s998_s14  ;;  %p1006_p11 = scmp.lt.u32.totalorder %s998_s14, %s1290_s9 }
 0x254   : > { %p1000_p6 = pnand %p999_p13, %p1353_p0 }
 0x255   : > { %p1005_p8 = por %p1004_p7, %p1003_p4 }
 0x256   : > { %p1001_p10 = pneg %p1000_p6 }
 0x257   : > { %p1007_p1 = por %p1006_p11, %p1005_p8 }
 0x259   : > { %p1008_p3 = pnand %p1007_p1, %p1001_p10 }
 0x25b   : > { %1011 = shalt.err (!%p1008_p3)
}
 0x25c   : > { %792 = dma.vmem_to_hbm [thread:$0]  (%p1353_p0), %s1292_s6, 128, %s1290_s9, %s609_s11  }
 0x25d PF: > { %s634_s13 = sand.u32 1, %s1042_s18   ;;  %p1354_p5 = scmp.ne.s32.totalorder %s1344_s25, 0 }
 0x25e   : > { %p1355_p9 = scmp.ge.s32.totalorder %s1054_s21, 2  ;;  %s635_s7 = scalar_lea.sflag [#allocation4], %s634_s13 }
 0x260   : > { %p806_p12 = pnand %p1355_p9, %p1354_p5 }
 0x262   : > { %1037 = dma.done.wait (!%p806_p12), %s635_s7, 128  }
 0x263   : > { %1039 = vsyncadd (!%p806_p12), %s635_s7, 4294967168  ;;  %p19_p2 = scmp.ge.s32.totalorder %s1205_s16, 4   ;;  %s1356_s18 = smov %s1046_s19 }
 0x264   : > { %s1357_s19 = smov %s1050_s20  ;;  %s1358_s20 = smov %s1214_s27 }
 0x265   : > { %s1359_s21 = smov %s1205_s16  ;;  %21 = sbr.rel (!%p19_p2) target bundleno = 6 (0x6), region = 93 }
 0x26c   :  { %640 = vsyncpa [#allocation3], 1 }
 0x26d   :  { %642 = vsyncpa [#allocation3 + $0x1], 1 }
 0x26e   :  { %643 = vsyncpa [#allocation6], 1 }
 0x26f   :  { %644 = vsyncpa [#allocation4], 1 }
 0x270   :  { %646 = vsyncpa [#allocation4 + $0x1], 1 }

// kernel: tpu_custom_call.1
= control target key start
LH: loop header
LB: loop body
LE: loop exit
PB: predicated region body
PF: predicated region fallthrough
CT: control target
= control target key end

     0   :  { %10 = vsyncpa [#allocation3], 0  ;;  %s1334_s0 = inlined_call_operand.hbm [shape: bf16[16,128], index: 0, kind: input, shape index: {}]   ;;  %s1335_s1 = inlined_call_operand.hbm [shape: bf16[128,256], index: 1, kind: input, shape index: {}]   ;;  %s1336_s2 = inlined_call_operand.vmem [shape: f32[1,256], index: 2, kind: input, shape index: {}]   ;;  %s1337_s3 = inlined_call_operand.hbm [shape: bf16[256,128], index: 3, kind: input, shape index: {}]   ;;  %s1338_s4 = inlined_call_operand.vmem [shape: f32[1,128], index: 4, kind: input, shape index: {}]   ;;  %s1339_s5 = inlined_call_operand.hbm [shape: f32[16,128], index: 5, kind: output, shape index: {}]  }
   0x1   :  { %12 = vsyncpa [#allocation3 + $0x1], 0 }
   0x2   :  { %13 = vsyncpa [#allocation6], 0 }
   0x3   :  { %14 = vsyncpa [#allocation4], 0 }
   0x4   :  { %16 = vsyncpa [#allocation4 + $0x1], 0  ;;  %s1095_s18 = smov 0   ;;  %s1097_s19 = smov 0  }
   0x5   :  { %s1099_s20 = smov 0   ;;  %s1101_s21 = smov 0  }
   0x6 LB: > { %s1116_s22 = sadd.s32 4294967295, %s1054_s21   ;;  %s711_s23 = sadd.s32 4294967294, %s1054_s21   ;;  %s1054_s21 = sphi %s1101_s21, %s1359_s21   ;;  %s1050_s20 = sphi %s1099_s20, %s1358_s20   ;;  %s1046_s19 = sphi %s1097_s19, %s1357_s19   ;;  %s1042_s18 = sphi %s1095_s18, %s1356_s18  }
   0x7   : > { %p42_p0 = scmp.ne.s32.totalorder %s1046_s19, %s1042_s18  ;;  %p1340_p1 = scmp.eq.s32.totalorder %s1116_s22, 0 }
   0x8   : > { %p156_p3 = scmp.eq.s32.totalorder %s711_s23, 1  ;;  %p712_p5 = scmp.ge.s32.totalorder %s1054_s21, 1 }
   0x9   : > { %p1125_p4 = por %p1340_p1, %p42_p0  ;;  %p163_p7 = scmp.lt.s32.totalorder %s1054_s21, 3 }
   0xa   : > { %p1130_p6 = por %p156_p3, %p42_p0  ;;  %s1056_s27 = smov [#allocation5]  }
   0xb   : > { %s1343_s24 = scalar_select %p1125_p4, 1, 0 }
   0xc   : > { %s1344_s25 = scalar_select %p1130_p6, 1, 0 }
   0xd   : > { %p1135_p8 = pnand %p712_p5, %p163_p7  ;;  %s175_s28 = sshll.u32 %s1056_s27, 4  ;;  %s1139_s28 = int_to_ptr.vmem [resolvable:$true] %s175_s28 }
   0xe   : > { %s1057_s30 = smov [#allocation7]   ;;  %s898_s9 = scalar_lea.hbm %s1335_s1, 2048 }
   0xf   : > { %p794_p9 = pneg %p1135_p8  ;;  %s191_s6 = sshll.u32 %s1057_s30, 4  ;;  %s1150_s6 = int_to_ptr.vmem [resolvable:$true] %s191_s6 }
  0x10   : > { %p899_p12 = scmp.ne.s32.totalorder %s1335_s1, %s898_s9  ;;  %p905_p5 = scmp.lt.u32.totalorder %s898_s9, %s1335_s1 }
  0x11   : > { %p1146_p11 = pnand %p794_p9, %p1340_p1 }
  0x13   : > { %p900_p13 = pneg %p1146_p11 }
  0x15   : > { %p901_p0 = pnand %p900_p13, %p899_p12 }
  0x17   : > { %p902_p3 = pneg %p901_p0 }
  0x19   : > { %p907_p7 = pnand %p905_p5, %p902_p3 }
  0x1b   : > { %910 = shalt.err (!%p907_p7)
}
  0x1c   : > { %s911_s14 = scalar_lea.vmem %s1139_s28, 2048  ;;  %p919_p2 = scmp.lt.s32.totalorder %s1139_s28, %s1139_s28 }
  0x1d   : > { %p912_p9 = scmp.ne.s32.totalorder %s1139_s28, %s911_s14  ;;  %p920_p12 = scmp.lt.s32.totalorder %s911_s14, %s911_s14 }
  0x1f   : > { %p914_p10 = pnand %p912_p9, %p900_p13  ;;  %p921_p0 = por %p920_p12, %p919_p2 }
  0x21   : > { %p915_p1 = pneg %p914_p10 }
  0x23   : > { %p922_p6 = pnand %p921_p0, %p915_p1 }
  0x25   : > { %925 = shalt.err (!%p922_p6)
}
  0x26   : > { %s1058_s15 = smov 128   ;;  %s1059_s16 = smov 8  }
  0x27   : > { %797 = dma.hbm_to_vmem [thread:$0]  (!%p1146_p11), %s1335_s1, 2048, %s1139_s28, [#allocation6], %s1058_s15, %s1058_s15, %s1059_s16  }
  0x28   : > { %s926_s7 = scalar_lea.hbm %s1337_s3, 2048 }
  0x29   : > { %p927_p2 = scmp.ne.s32.totalorder %s1337_s3, %s926_s7  ;;  %p933_p10 = scmp.lt.u32.totalorder %s926_s7, %s1337_s3 }
  0x2b   : > { %p929_p1 = pnand %p927_p2, %p900_p13 }
  0x2d   : > { %p930_p6 = pneg %p929_p1 }
  0x2f   : > { %p935_p3 = pnand %p933_p10, %p930_p6 }
  0x31   : > { %938 = shalt.err (!%p935_p3)
}
  0x32   : > { %s939_s28 = scalar_lea.vmem %s1150_s6, 2048  ;;  %p947_p12 = scmp.lt.s32.totalorder %s1150_s6, %s1150_s6 }
  0x33   : > { %p940_p5 = scmp.ne.s32.totalorder %s1150_s6, %s939_s28  ;;  %p948_p0 = scmp.lt.s32.totalorder %s939_s28, %s939_s28 }
  0x35   : > { %p942_p7 = pnand %p940_p5, %p900_p13  ;;  %p949_p2 = por %p948_p0, %p947_p12 }
  0x37   : > { %p943_p9 = pneg %p942_p7 }
  0x39   : > { %p950_p1 = pnand %p949_p2, %p943_p9 }
  0x3b   : > { %953 = shalt.err (!%p950_p1)
}
  0x3c   : > { %s1060_s12 = smov 64   ;;  %s1061_s13 = smov 4  }
  0x3d   : > { %800 = dma.hbm_to_vmem [thread:$0]  (!%p1146_p11), %s1337_s3, 2048, %s1150_s6, [#allocation6], %s1060_s12, %s1060_s12, %s1061_s13  }
  0x3e   : > { %s1205_s16 = sadd.s32 1, %s1054_s21   ;;  %s29_s23 = sadd.s32 1, %s1050_s20 }
  0x3f   : > { %s26_s17 = ssub.s32 %s1054_s21, %s1205_s16  ;;  %p36_p6 = scmp.ne.s32.totalorder %s1050_s20, %s1046_s19 }
  0x40   : > { %p27_p13 = scmp.eq.s32.totalorder %s26_s17, 0  ;;  %p37_p10 = scmp.eq.s32.totalorder %s1054_s21, 0 }
  0x41   : > { %p1347_p5 = scmp.eq.s32.totalorder %s1116_s22, 1  ;;  %p811_p9 = scmp.lt.s32.totalorder %s1054_s21, 2 }
  0x42   : > { %s1214_s27 = scalar_select %p27_p13, %s1050_s20, %s29_s23  }
  0x43   : > { %p38_p3 = por %p37_p10, %p36_p6  ;;  %p1218_p7 = por %p1347_p5, %p36_p6 }
  0x44   : > { %s208_s29 = sand.u32 1, %s1050_s20   ;;  %s717_s6 = sshll.u32 %s1054_s21, 6 }
  0x45   : > { %s1348_s30 = scalar_select %p1218_p7, 1, 0 }
  0x46   : > { %s716_s7 = sshll.u32 %s208_s29, 2  ;;  %s1228_s10 = scalar_lea.hbm %s1334_s0, %s717_s6 }
  0x47   : > { %s212_s11 = scalar_lea.vmem [#allocation2], %s716_s7  ;;  %p1232_p11 = pnand %p811_p9, %p38_p3 }
  0x48   : > { %s219_s28 = sshll.u32 %s212_s11, 4  ;;  %s209_s13 = scalar_lea.sflag [#allocation3], %s208_s29  ;;  %s1230_s28 = int_to_ptr.vmem [resolvable:$true] %s219_s28 }
  0x49   : > { %s954_s14 = scalar_lea.hbm %s1228_s10, 64  ;;  %p956_p0 = pneg %p1232_p11 }
  0x4a   : > { %p955_p12 = scmp.ne.s32.totalorder %s1228_s10, %s954_s14  ;;  %s959_s23 = scalar_lea.hbm %s1334_s0, 128 }
  0x4b   : > { %p960_p13 = scmp.lt.u32.totalorder %s1228_s10, %s1334_s0  ;;  %p961_p6 = scmp.lt.u32.totalorder %s959_s23, %s954_s14 }
  0x4c   : > { %p957_p2 = pnand %p956_p0, %p955_p12  ;;  %p963_p3 = scmp.lt.u32.totalorder %s954_s14, %s1228_s10 }
  0x4d   : > { %p962_p10 = por %p961_p6, %p960_p13 }
  0x4e   : > { %p958_p1 = pneg %p957_p2 }
  0x4f   : > { %p964_p5 = por %p963_p3, %p962_p10 }
  0x51   : > { %p965_p9 = pnand %p964_p5, %p958_p1 }
  0x53   : > { %968 = shalt.err (!%p965_p9)
}
  0x54   : > { %s969_s29 = scalar_lea.vmem %s1230_s28, 64  ;;  %s1062_s8 = smov [#allocation2]  }
  0x55   : > { %p970_p12 = scmp.ne.s32.totalorder %s1230_s28, %s969_s29  ;;  %s974_s9 = sshll.u32 %s1062_s8, 4  ;;  %s975_s9 = int_to_ptr.vmem [resolvable:$false] %s974_s9 }
  0x56   : > { %s976_s11 = scalar_lea.vmem %s975_s9, 128  ;;  %p977_p4 = scmp.lt.s32.totalorder %s1230_s28, %s975_s9 }
  0x57   : > { %p972_p2 = pnand %p970_p12, %p956_p0  ;;  %p978_p13 = scmp.lt.s32.totalorder %s976_s11, %s969_s29 }
  0x59   : > { %p973_p7 = pneg %p972_p2  ;;  %p979_p6 = por %p978_p13, %p977_p4 }
  0x5b   : > { %p980_p10 = pnand %p979_p6, %p973_p7 }
  0x5d   : > { %983 = shalt.err (!%p980_p10)
}
  0x5e   : > { %804 = dma.hbm_to_vmem [thread:$0]  (!%p1232_p11), %s1228_s10, 64, %s1230_s28, %s209_s13  }
  0x5f   : > { %228 = sbr.rel (%p1135_p8) target bundleno = 605 (0x25d), region = 40  ;;  %s1264_s14 = sand.u32 (!%p1135_p8), 1, %s1046_s19  }
  0x60   : > { %s719_s15 = sshll.u32 (!%p1135_p8), %s1264_s14, 2  ;;  %s231_s17 = scalar_lea.sflag (!%p1135_p8), [#allocation3], %s1264_s14 }
  0x61   : > { %s1268_s23 = scalar_lea.vmem (!%p1135_p8), [#allocation2], %s719_s15  ;;  %p1350_p4 = scmp.ne.s32.totalorder (!%p1135_p8), %s1343_s24, 0 }
  0x66   : > { %1029 = dma.done.wait (%p1350_p4), %s231_s17, 64  }
  0x67   : > { %1031 = vsyncadd (%p1350_p4), %s231_s17, 4294967232  ;;  %p1351_p7 = scmp.eq.s32.totalorder %s1116_s22, 0 }
  0x69   : > { %1033 = dma.done.wait (%p1351_p7), [#allocation6], 4096   ;;  %p1352_p8 = pmov %p1351_p7 }
  0x6a   : > { %v1063_v0 = vmov 0   ;;  %v854_v1 = vld [vmem:[#allocation5 + $0x4] ss:$8 sps:$4 sm:$0xff]   ;;  %v856_v2 = vld [vmem:[#allocation5] ss:$8 sps:$4 sm:$0xff]   ;;  %v882_v22 = vld [vmem:[#allocation7 + $0x50] sm:$0xff]   ;;  %v289_v34 = vlaneseq }
  0x6b   : > { %1035 = vsyncadd (%p1352_p8), [#allocation6], 4294963200  ;;  %411 = vmatprep.mubr.bf16.mxu0 %v1063_v0  ;;  %379 = vmatprep.subr.bf16.mxu0 %v854_v1  ;;  %v857_v3 = vld [vmem:[#allocation5 + $0x14] ss:$8 sps:$4 sm:$0xff]   ;;  %v859_v4 = vld [vmem:[#allocation5 + $0x10] ss:$8 sps:$4 sm:$0xff]  }
  0x6c   : > { %380 = vmatpush1.bf16.msra.mxu0 %v856_v2  ;;  %v860_v5 = vld [vmem:[#allocation5 + $0x24] ss:$8 sps:$4 sm:$0xff]   ;;  %v862_v6 = vld [vmem:[#allocation5 + $0x20] ss:$8 sps:$4 sm:$0xff]   ;;  %v863_v7 = vld [vmem:[#allocation5 + $0x34] ss:$8 sps:$4 sm:$0xff]  }
  0x6d   : > { %381 = vmatprep.subr.bf16.mxu0 %v857_v3  ;;  %v865_v8 = vld [vmem:[#allocation5 + $0x30] ss:$8 sps:$4 sm:$0xff]   ;;  %v866_v9 = vld [vmem:[#allocation5 + $0x44] ss:$8 sps:$4 sm:$0xff]   ;;  %v868_v12 = vld [vmem:[#allocation5 + $0x40] ss:$8 sps:$4 sm:$0xff]  }
  0x6e   : > { %v878_v10 = vld [vmem:[#allocation7 + $0x40] sm:$0xff]   ;;  %v880_v13 = vld [vmem:[#allocation7 + $0x48] sm:$0xff]   ;;  %v869_v15 = vld [vmem:[#allocation5 + $0x54] ss:$8 sps:$4 sm:$0xff]   ;;  %v290_v35 = vshrl.u32 %v289_v34, 7  ;;  %s722_s10 = sshll.u32 %s1264_s14, 3 }
  0x6f   : > { %v879_v11 = vld [vmem:[#allocation7] sm:$0xff]   ;;  %760 = vmatprep.subr.bf16.mxu1 %v878_v10  ;;  %v881_v14 = vld [vmem:[#allocation7 + $0x8] sm:$0xff]   ;;  %v871_v16 = vld [vmem:[#allocation5 + $0x50] ss:$8 sps:$4 sm:$0xff]   ;;  %s757_s13 = sshll.u32 %s1116_s22, 7  ;;  %s268_s7 = scalar_lea.vmem [#allocation8], %s722_s10 }
  0x70   : > { %382 = vmatpush1.bf16.msra.mxu0 %v859_v4  ;;  %761 = vmatpush3.bf16.msra.mxu1 %v879_v11  ;;  %v872_v17 = vld [vmem:[#allocation5 + $0x64] ss:$8 sps:$4 sm:$0xff]   ;;  %v874_v18 = vld [vmem:[#allocation5 + $0x60] ss:$8 sps:$4 sm:$0xff]   ;;  %v875_v19 = vld [vmem:[#allocation5 + $0x74] ss:$8 sps:$4 sm:$0xff]   ;;  %s1290_s9 = scalar_lea.hbm %s1339_s5, %s757_s13 }
  0x71   : > { %383 = vmatprep.subr.bf16.mxu0 %v860_v5  ;;  %762 = vmatprep.subr.bf16.mxu1 %v880_v13  ;;  %v877_v20 = vld [vmem:[#allocation5 + $0x70] ss:$8 sps:$4 sm:$0xff]   ;;  %v886_v26 = vld [vmem:[#allocation7 + $0x60] sm:$0xff]   ;;  %v888_v28 = vld [vmem:[#allocation7 + $0x68] sm:$0xff]   ;;  %v291_v36 = vsub.s32 0, %v290_v35  ;;  %v295_v38 = vsub.s32 1, %v290_v35 }
  0x72   : > { %v270_v21 = vld [vmem:[%s1268_s23] sm:$0xf]  ;;  %v883_v23 = vld [vmem:[#allocation7 + $0x10] sm:$0xff]   ;;  %v887_v27 = vld [vmem:[#allocation7 + $0x20] sm:$0xff]   ;;  %s622_s6 = sshll.u32 %s268_s7, 4  ;;  %s609_s11 = scalar_lea.sflag [#allocation4], %s1264_s14  ;;  %s1292_s6 = int_to_ptr.vmem [resolvable:$true] %s622_s6 }
  0x73   : > { %v884_v24 = vld [vmem:[#allocation7 + $0x58] sm:$0xff]   ;;  %v889_v29 = vld [vmem:[#allocation7 + $0x28] sm:$0xff]   ;;  %v890_v30 = vld [vmem:[#allocation7 + $0x70] sm:$0xff]   ;;  %s984_s15 = scalar_lea.vmem %s1292_s6, 128  ;;  %p1353_p0 = scmp.ne.s32.totalorder %s1348_s30, 0 }
  0x74   : > { %384 = vmatpush1.bf16.msra.mxu0 %v862_v6  ;;  %763 = vmatpush3.bf16.msra.mxu1 %v881_v14  ;;  %v885_v25 = vld [vmem:[#allocation7 + $0x18] sm:$0xff]   ;;  %v891_v31 = vld [vmem:[#allocation7 + $0x30] sm:$0xff]   ;;  %p985_p11 = scmp.ne.s32.totalorder %s1292_s6, %s984_s15  ;;  %s1064_s22 = smov [#allocation8]  }
  0x75   : > { %385 = vmatprep.subr.bf16.mxu0 %v863_v7  ;;  %764 = vmatprep.subr.bf16.mxu1 %v882_v22  ;;  %v892_v32 = vld [vmem:[#allocation7 + $0x78] sm:$0xff]   ;;  %s988_s17 = sshll.u32 %s1064_s22, 4  ;;  %s989_s17 = int_to_ptr.vmem [resolvable:$false] %s988_s17 }
  0x76   : > { %v893_v33 = vld [vmem:[#allocation7 + $0x38] sm:$0xff]   ;;  %p986_p1 = pnand %p985_p11, %p1353_p0  ;;  %s990_s23 = scalar_lea.vmem %s989_s17, 256 }
  0x77   : > { %v287_v37 = vld [vmem:[%s1336_s2] sm:$0x3]  ;;  %p991_p5 = scmp.lt.s32.totalorder %s1292_s6, %s989_s17  ;;  %p992_p9 = scmp.lt.s32.totalorder %s990_s23, %s984_s15 }
  0x78   : > { %386 = vmatpush1.bf16.msra.mxu0 %v865_v8  ;;  %765 = vmatpush3.bf16.msra.mxu1 %v883_v23  ;;  %v292_v39 = vrot.slane %v287_v37, %v291_v36  ;;  %v296_v40 = vrot.slane %v287_v37, %v295_v38  ;;  %v739_v60 = vld [vmem:[%s1338_s4] ss:$0 sm:$0xff]  ;;  %p987_p3 = pneg %p986_p1 }
  0x79   : > { %387 = vmatprep.subr.bf16.mxu0 %v866_v9  ;;  %766 = vmatprep.subr.bf16.mxu1 %v884_v24  ;;  %p993_p12 = por %p992_p9, %p991_p5 }
  0x7b   : > { %p994_p2 = pnand %p993_p12, %p987_p3 }
  0x7c   : > { %388 = vmatpush1.bf16.msra.mxu0 %v868_v12  ;;  %767 = vmatpush3.bf16.msra.mxu1 %v885_v25 }
  0x7d   : > { %389 = vmatprep.subr.bf16.mxu0 %v869_v15  ;;  %768 = vmatprep.subr.bf16.mxu1 %v886_v26 }
  0x80   : > { %390 = vmatpush1.bf16.msra.mxu0 %v871_v16  ;;  %769 = vmatpush3.bf16.msra.mxu1 %v887_v27 }
  0x81   : > { %391 = vmatprep.subr.bf16.mxu0 %v872_v17  ;;  %770 = vmatprep.subr.bf16.mxu1 %v888_v28 }
  0x84   : > { %392 = vmatpush1.bf16.msra.mxu0 %v874_v18  ;;  %771 = vmatpush3.bf16.msra.mxu1 %v889_v29 }
  0x85   : > { %393 = vmatprep.subr.bf16.mxu0 %v875_v19  ;;  %772 = vmatprep.subr.bf16.mxu1 %v890_v30 }
  0x88   : > { %394 = vmatpush1.bf16.msra.mxu0 %v877_v20  ;;  %773 = vmatpush3.bf16.msra.mxu1 %v891_v31 }
  0x89   : > { %774 = vmatprep.subr.bf16.mxu1 %v892_v32 }
  0x8b   : > { %412 = vmatmul.mubr.bf16.vlgmr.msra.gmra.mrb[0].mxu0 %v270_v21 }
  0x8c   : > { %775 = vmatpush3.bf16.msra.mxu1 %v893_v33 }
 0x15e   : > { %v413_v41 = vpop.f32.mrb[0].mxu0 }
 0x15f   : > { %v414_v42 = vadd.f32 %v413_v41, %v292_v39  ;;  %v415_v43 = vpop.f32.mrb[1].mxu0 }
 0x160   : > { %v416_v44 = vadd.f32 %v415_v43, %v296_v40  ;;  %v417_v45 = vpop.f32.mrb[2].mxu0 }
 0x161   : > { %v422_v46 = vmul.f32 0.70710677, %v414_v42  ;;  %v418_v47 = vpop.f32.mrb[3].mxu0  ;;  %v420_v51 = vmul.f32 0.5, %v414_v42 }
 0x162   : > { %v423_v48 = vmul.f32 0.70710677, %v416_v44  ;;  %v421_v53 = vmul.f32 0.5, %v416_v44 }
 0x163   : > { %894 = verf.f32 %v422_v46 }
 0x164   : > { %896 = verf.f32 %v423_v48 }
 0x16d   : > { %v895_v49 = vpop.eup %894 }
 0x16e   : > { %v897_v50 = vpop.eup %896  ;;  %v426_v52 = vadd.f32 1.0, %v895_v49 }
 0x16f   : > { %v427_v54 = vadd.f32 1.0, %v897_v50 }
 0x170   : > { %v428_v55 = vmul.f32 %v426_v52, %v420_v51 }
 0x171   : > { %v429_v56 = vmul.f32 %v427_v54, %v421_v53 }
 0x172   : > { %v430_v58 = vpack.c.bf16 %v428_v55, %v428_v55 }
 0x173   : > { %v431_v57 = vpack.c.bf16 %v429_v56, %v429_v56 }
 0x175   : > { %599 = vmatprep.mubr.bf16.mxu1 %v431_v57 }
 0x176   : > { %600 = vmatmul.mubr.bf16.vlgmr.msra.gmra.mrb[0].mxu1 %v430_v58 }
 0x249   : > { %v776_v59 = vpop.f32.mrb[0].mxu1 }
 0x24a   : > { %v777_v61 = vpop.f32.mrb[1].mxu1 }
 0x24b   : > { %v778_v62 = vadd.f32 %v777_v61, %v776_v59  ;;  %v779_v63 = vpop.f32.mrb[2].mxu1 }
 0x24c   : > { %v780_v0 = vpop.f32.mrb[3].mxu1 }
 0x24d   : > { %v602_v1 = vadd.f32 %v778_v62, %v739_v60 }
 0x24f   : > { %607 = vst [vmem:[%s268_s7] sm:$0xff] %v602_v1 }
 0x250   : > { %997 = shalt.err (!%p994_p2)
}
 0x251   : > { %s998_s14 = scalar_lea.hbm %s1290_s9, 128  ;;  %s1002_s10 = scalar_lea.hbm %s1339_s5, 256 }
 0x252   : > { %p999_p13 = scmp.ne.s32.totalorder %s1290_s9, %s998_s14  ;;  %p1003_p4 = scmp.lt.u32.totalorder %s1290_s9, %s1339_s5 }
 0x253   : > { %p1004_p7 = scmp.lt.u32.totalorder %s1002_s10, %s998_s14  ;;  %p1006_p11 = scmp.lt.u32.totalorder %s998_s14, %s1290_s9 }
 0x254   : > { %p1000_p6 = pnand %p999_p13, %p1353_p0 }
 0x255   : > { %p1005_p8 = por %p1004_p7, %p1003_p4 }
 0x256   : > { %p1001_p10 = pneg %p1000_p6 }
 0x257   : > { %p1007_p1 = por %p1006_p11, %p1005_p8 }
 0x259   : > { %p1008_p3 = pnand %p1007_p1, %p1001_p10 }
 0x25b   : > { %1011 = shalt.err (!%p1008_p3)
}
 0x25c   : > { %792 = dma.vmem_to_hbm [thread:$0]  (%p1353_p0), %s1292_s6, 128, %s1290_s9, %s609_s11  }
 0x25d PF: > { %s634_s13 = sand.u32 1, %s1042_s18   ;;  %p1354_p5 = scmp.ne.s32.totalorder %s1344_s25, 0 }
 0x25e   : > { %p1355_p9 = scmp.ge.s32.totalorder %s1054_s21, 2  ;;  %s635_s7 = scalar_lea.sflag [#allocation4], %s634_s13 }
 0x260   : > { %p806_p12 = pnand %p1355_p9, %p1354_p5 }
 0x262   : > { %1037 = dma.done.wait (!%p806_p12), %s635_s7, 128  }
 0x263   : > { %1039 = vsyncadd (!%p806_p12), %s635_s7, 4294967168  ;;  %p19_p2 = scmp.ge.s32.totalorder %s1205_s16, 4   ;;  %s1356_s18 = smov %s1046_s19 }
 0x264   : > { %s1357_s19 = smov %s1050_s20  ;;  %s1358_s20 = smov %s1214_s27 }
 0x265   : > { %s1359_s21 = smov %s1205_s16  ;;  %21 = sbr.rel (!%p19_p2) target bundleno = 6 (0x6), region = 93 }
 0x26c   :  { %640 = vsyncpa [#allocation3], 1 }
 0x26d   :  { %642 = vsyncpa [#allocation3 + $0x1], 1 }
 0x26e   :  { %643 = vsyncpa [#allocation6], 1 }
 0x26f   :  { %644 = vsyncpa [#allocation4], 1 }
 0x270   :  { %646 = vsyncpa [#allocation4 + $0x1], 1 }

</bundles_post_ra>
